<compile_context>
chip_gen: v7x
topology: tpu7x:2x2x1
jax: 0.10.0
libtpu: 0.0.40
codegen_flags: <defaults>
</compile_context>

<pallas_src>
import jax
import jax.numpy as jnp
from jax.experimental import pallas as pl
from jax.experimental.pallas import tpu as pltpu


def _round_up(x, m):
    return (x + m - 1) // m * m


def _stats_kernel(x_ref, psum_ref, psq_ref):
    """Accumulate 8-sublane-partial per-channel sum / sum-of-squares.

    x_ref:   (tile_n // 8, 8, D) block of the row-split input.
    psum_ref/psq_ref: (8, D) f32 partial accumulators (one pair per core shard);
    the final cross-sublane reduction happens in the wrapper.
    """
    @pl.when(pl.program_id(1) == 0)
    def _():
        psum_ref[...] = jnp.zeros_like(psum_ref)
        psq_ref[...] = jnp.zeros_like(psq_ref)

    xt = x_ref[...].astype(jnp.float32)            # (tile_n // 8, 8, D)
    psum_ref[...] += jnp.sum(xt, axis=0)           # VPU adds; XLU reduce deferred
    psq_ref[...] += jnp.sum(xt * xt, axis=0)


def _head_kernel(x_ref, w_ref, b_ref, o_ref):
    """Fused head: matmul (BN + 1/temp already folded into w/b) -> +bias -> sigmoid."""
    y = jnp.dot(x_ref[...], w_ref[...], preferred_element_type=jnp.float32)
    o_ref[...] = jax.nn.sigmoid(y + b_ref[...]).astype(o_ref.dtype)


def linear_head_forward(x, weight, bias, *, temp=1.0, use_norm=True,
                        eps=1e-5, max_tile_n=1024):
    """x: (B, T, D) (f32 or bf16); weight: (L, D); bias: (L,). Returns (B, L, T) f32."""
    B, T, D = x.shape
    L = weight.shape[0]
    N = B * T

    # Row-tile sizing: as large as reasonable (amortize per-step overhead, fill
    # the MXU); 1024 is a multiple of 256 and keeps the double-buffered working
    # set comfortably inside v7x's smaller (64 MiB) VMEM.
    tile_n = min(max_tile_n, _round_up(N, 8))
    num_splits = 2                      # stats sharded over (up to) 2 TensorCores
    n_pad = _round_up(N, num_splits * tile_n)

    xf = x.reshape(N, D)
    if n_pad != N:
        xf = jnp.pad(xf, ((0, n_pad - N), (0, 0)))   # zero rows: no effect on sums

    if use_norm:
        # TODO(synk): eval-mode BatchNorm uses stateful running_mean/var buffers;
        # this implements training-mode (batch statistics), matching the module's
        # default train() behaviour.
        steps = n_pad // (num_splits * tile_n)
        xf3 = xf.reshape(n_pad // 8, 8, D)
        psum, psq = pl.pallas_call(
            _stats_kernel,
            out_shape=(jax.ShapeDtypeStruct((num_splits * 8, D), jnp.float32),
                       jax.ShapeDtypeStruct((num_splits * 8, D), jnp.float32)),
            grid=(num_splits, steps),
            in_specs=[pl.BlockSpec((tile_n // 8, 8, D),
                                   lambda c, i: (c * steps + i, 0, 0))],
            out_specs=(pl.BlockSpec((8, D), lambda c, i: (c, 0)),
                       pl.BlockSpec((8, D), lambda c, i: (c, 0))),
            compiler_params=pltpu.CompilerParams(
                dimension_semantics=("parallel", "arbitrary")),
        )(xf3)
        s = jnp.sum(psum, axis=0)                    # (D,)
        sq = jnp.sum(psq, axis=0)
        mean = s / N
        # Biased variance, as PyTorch BN uses for normalization.  NOTE:
        # E[x^2] - mean^2 can cancel if |mean| >> std; acceptable for typical
        # embedding statistics.
        var = sq / N - mean * mean
        rstd = jax.lax.rsqrt(var + eps)
    else:
        mean = jnp.zeros((D,), jnp.float32)
        rstd = jnp.ones((D,), jnp.float32)

    # Fold BatchNorm and the temperature scale into the linear weight / bias:
    #   ((x - mean) * rstd) @ W^T + b == x @ (rstd * W^T) + (b - (mean*rstd) @ W^T)
    inv_temp = 1.0 / temp
    wt = weight.T.astype(jnp.float32)                         # (D, L)
    w_f = wt * rstd[:, None]
    b_f = bias.astype(jnp.float32) - (mean * rstd) @ wt       # (L,)
    w_f = w_f * inv_temp
    b_f = (b_f * inv_temp).reshape(1, L)

    # Lane-dense output: pad L to a multiple of 128 with zero columns so every
    # store is a full (unmasked) vector store; slice the padding off afterwards.
    l_pad = _round_up(L, 128)
    if l_pad != L:
        w_f = jnp.pad(w_f, ((0, 0), (0, l_pad - L)))
        b_f = jnp.pad(b_f, ((0, 0), (0, l_pad - L)))
    w_f = w_f.astype(x.dtype)           # bf16 x -> bf16 weight: native MXU path

    out = pl.pallas_call(
        _head_kernel,
        out_shape=jax.ShapeDtypeStruct((n_pad, l_pad), jnp.float32),
        grid=(n_pad // tile_n,),
        in_specs=[pl.BlockSpec((tile_n, D), lambda i: (i, 0)),
                  pl.BlockSpec((D, l_pad), lambda i: (0, 0)),
                  pl.BlockSpec((1, l_pad), lambda i: (0, 0))],
        out_specs=pl.BlockSpec((tile_n, l_pad), lambda i: (i, 0)),
        compiler_params=pltpu.CompilerParams(
            dimension_semantics=("parallel",)),
    )(xf, w_f, b_f)

    strong = out[:N, :L].reshape(B, T, L)
    return jnp.transpose(strong, (0, 2, 1))          # (B, L, T), like PyTorch


def _reference_forward(x, weight, bias, *, temp=1.0, use_norm=True, eps=1e-5):
    """Pure-JAX reference mirroring the PyTorch module (training-mode BN)."""
    B, T, D = x.shape
    xf = x.reshape(B * T, D).astype(jnp.float32)
    if use_norm:
        mean = jnp.mean(xf, axis=0, keepdims=True)
        var = jnp.mean((xf - mean) ** 2, axis=0, keepdims=True)
        xf = (xf - mean) / jnp.sqrt(var + eps)
    y = xf @ weight.T.astype(jnp.float32) + bias.astype(jnp.float32)
    strong = jax.nn.sigmoid(y / temp).reshape(B, T, -1)
    return jnp.transpose(strong, (0, 2, 1))


if __name__ == "__main__":
    B, T, D, L = 2, 8, 32, 16          # batch, frames, feature dim, num_labels

    key = jax.random.PRNGKey(0)
    kx, kw = jax.random.split(key)
    x = jax.random.normal(kx, (B, T, D), dtype=jnp.float32)

    # Deterministic parameter init matching the module's __init__:
    #   linear.weight ~ N(0, 0.01), linear.bias = 0, BatchNorm2d affine=False.
    weight = 0.01 * jax.random.normal(kw, (L, D), dtype=jnp.float32)
    bias = jnp.zeros((L,), dtype=jnp.float32)

    # use_norm=True, temp=1 (default module path)
    out = linear_head_forward(x, weight, bias, temp=1.0, use_norm=True)
    out = jax.block_until_ready(out)
    ref = _reference_forward(x, weight, bias, temp=1.0, use_norm=True)
    assert out.shape == (B, L, T)
    assert jnp.allclose(out, ref, atol=2e-5, rtol=1e-4), (
        f"max abs err {jnp.max(jnp.abs(out - ref))}")

    # use_norm=False, temp=2 (exercises the no-BN fold path)
    out2 = linear_head_forward(x, weight, bias, temp=2.0, use_norm=False)
    out2 = jax.block_until_ready(out2)
    ref2 = _reference_forward(x, weight, bias, temp=2.0, use_norm=False)
    assert jnp.allclose(out2, ref2, atol=2e-5, rtol=1e-4), (
        f"max abs err {jnp.max(jnp.abs(out2 - ref2))}")

    print("KERNEL_OK")
</pallas_src>

<mosaic_0001>
module attributes {stable_mosaic.version = 11 : i64} {
  func.func @_stats_kernel(%arg0: i32, %arg1: i32, %arg2: memref<2x8x32xf32, #tpu.memory_space<vmem>>, %arg3: memref<8x32xf32, #tpu.memory_space<vmem>>, %arg4: memref<8x32xf32, #tpu.memory_space<vmem>>) attributes {dimension_semantics = [#tpu.dimension_semantics<parallel>, #tpu.dimension_semantics<arbitrary>], iteration_bounds = array<i64: 2, 1>, scalar_prefetch = 0 : i64, scratch_operands = 0 : i64, tpu.core_type = #tpu.core_type<tc>, window_params = [{transform_indices = @transform_0, window_bounds = array<i64: 2, 8, 32>}, {transform_indices = @transform_1, window_bounds = array<i64: 8, 32>}, {transform_indices = @transform_2, window_bounds = array<i64: 8, 32>}]} {
    %c0_i32 = arith.constant 0 : i32
    %0 = arith.cmpi eq, %arg1, %c0_i32 : i32
    %1 = arith.extui %0 : i1 to i32
    %c0_i32_0 = arith.constant 0 : i32
    %2 = arith.cmpi ne, %1, %c0_i32_0 : i32
    scf.if %2 {
      %cst_12 = arith.constant 0.000000e+00 : f32
      %13 = vector.broadcast %cst_12 : f32 to vector<8x32xf32>
      %c0_13 = arith.constant 0 : index
      %c0_14 = arith.constant 0 : index
      %14 = vector.load %arg3[%c0_13, %c0_14] : memref<8x32xf32, #tpu.memory_space<vmem>>, vector<8x32xf32>
      tpu.vector_store %arg3[%c0_13, %c0_14], %13 {strides = array<i32>} : memref<8x32xf32, #tpu.memory_space<vmem>>, vector<8x32xf32>,
      %cst_15 = arith.constant 0.000000e+00 : f32
      %15 = vector.broadcast %cst_15 : f32 to vector<8x32xf32>
      %c0_16 = arith.constant 0 : index
      %c0_17 = arith.constant 0 : index
      %16 = vector.load %arg4[%c0_16, %c0_17] : memref<8x32xf32, #tpu.memory_space<vmem>>, vector<8x32xf32>
      tpu.vector_store %arg4[%c0_16, %c0_17], %15 {strides = array<i32>} : memref<8x32xf32, #tpu.memory_space<vmem>>, vector<8x32xf32>,
    } else {
    }
    %c0 = arith.constant 0 : index
    %c0_1 = arith.constant 0 : index
    %c0_2 = arith.constant 0 : index
    %3 = vector.load %arg2[%c0, %c0_1, %c0_2] : memref<2x8x32xf32, #tpu.memory_space<vmem>>, vector<2x8x32xf32>
    %c0_3 = arith.constant 0 : index
    %c0_4 = arith.constant 0 : index
    %4 = vector.load %arg3[%c0_3, %c0_4] : memref<8x32xf32, #tpu.memory_space<vmem>>, vector<8x32xf32>
    %cst = arith.constant dense<0.000000e+00> : vector<8x32xf32>
    %5 = vector.multi_reduction <add>, %3, %cst [0] : vector<2x8x32xf32> to vector<8x32xf32>
    %6 = arith.addf %4, %5 : vector<8x32xf32>
    %c0_5 = arith.constant 0 : index
    %c0_6 = arith.constant 0 : index
    %7 = vector.load %arg3[%c0_5, %c0_6] : memref<8x32xf32, #tpu.memory_space<vmem>>, vector<8x32xf32>
    tpu.vector_store %arg3[%c0_5, %c0_6], %6 {strides = array<i32>} : memref<8x32xf32, #tpu.memory_space<vmem>>, vector<8x32xf32>,
    %c0_7 = arith.constant 0 : index
    %c0_8 = arith.constant 0 : index
    %8 = vector.load %arg4[%c0_7, %c0_8] : memref<8x32xf32, #tpu.memory_space<vmem>>, vector<8x32xf32>
    %9 = arith.mulf %3, %3 : vector<2x8x32xf32>
    %cst_9 = arith.constant dense<0.000000e+00> : vector<8x32xf32>
    %10 = vector.multi_reduction <add>, %9, %cst_9 [0] : vector<2x8x32xf32> to vector<8x32xf32>
    %11 = arith.addf %8, %10 : vector<8x32xf32>
    %c0_10 = arith.constant 0 : index
    %c0_11 = arith.constant 0 : index
    %12 = vector.load %arg4[%c0_10, %c0_11] : memref<8x32xf32, #tpu.memory_space<vmem>>, vector<8x32xf32>
    tpu.vector_store %arg4[%c0_10, %c0_11], %11 {strides = array<i32>} : memref<8x32xf32, #tpu.memory_space<vmem>>, vector<8x32xf32>,
    return
  }
  func.func @transform_0(%arg0: i32, %arg1: i32) -> (i32, i32, i32) {
    %c1_i32 = arith.constant 1 : i32
    %0 = arith.muli %arg0, %c1_i32 : i32
    %1 = arith.addi %0, %arg1 : i32
    %c0_i32 = arith.constant 0 : i32
    %c0_i32_0 = arith.constant 0 : i32
    %c0_i32_1 = arith.constant 0 : i32
    return %1, %c0_i32, %c0_i32_0 : i32, i32, i32
  }
  func.func @transform_1(%arg0: i32, %arg1: i32) -> (i32, i32) {
    %c0_i32 = arith.constant 0 : i32
    %c0_i32_0 = arith.constant 0 : i32
    return %arg0, %c0_i32 : i32, i32
  }
  func.func @transform_2(%arg0: i32, %arg1: i32) -> (i32, i32) {
    %c0_i32 = arith.constant 0 : i32
    %c0_i32_0 = arith.constant 0 : i32
    return %arg0, %c0_i32 : i32, i32
  }
}

</mosaic_0001>

<bundles_post_ra>
// kernel: tpu_custom_call.1
= control target key start
LH: loop header
LB: loop body
LE: loop exit
PB: predicated region body
PF: predicated region fallthrough
CT: control target
= control target key end

     0   :  { %8 = vsyncpa [#allocation3], 0  ;;  %s829_s0 = inlined_call_operand.hbm [shape: f32[4,8,32], index: 0, kind: input, shape index: {}]   ;;  %s830_s1 = inlined_call_operand.hbm [shape: f32[16,32], index: 1, kind: output, shape index: {0}]   ;;  %s831_s2 = inlined_call_operand.hbm [shape: f32[16,32], index: 2, kind: output, shape index: {1}]  }
   0x1   :  { %10 = vsyncpa [#allocation3 + $0x1], 0 }
   0x2   :  { %11 = vsyncpa [#allocation4], 0 }
   0x3   :  { %13 = vsyncpa [#allocation4 + $0x1], 0 }
   0x4   :  { %14 = vsyncpa [#allocation7], 0 }
   0x5   :  { %16 = vsyncpa [#allocation7 + $0x1], 0  ;;  %s612_s9 = smov 0   ;;  %s614_s10 = smov 0  }
   0x6   :  { %s616_s11 = smov 0   ;;  %s618_s12 = smov 0  }
   0x7   :  { %s620_s13 = smov 0   ;;  %s622_s14 = smov 0  }
   0x8 LB: > { %s357_s15 = sadd.s32 4294967295, %s589_s14   ;;  %s358_s16 = sadd.s32 4294967294, %s589_s14   ;;  %s589_s14 = sphi %s622_s14, %s22_s14   ;;  %s585_s13 = sphi %s620_s13, %s846_s13   ;;  %s581_s12 = sphi %s618_s12, %s845_s12   ;;  %s577_s11 = sphi %s616_s11, %s844_s11   ;;  %s573_s10 = sphi %s614_s10, %s843_s10   ;;  %s569_s9 = sphi %s612_s9, %s842_s9  }
   0x9   : > { %s34_s17 = sadd.s32 1, %s585_s13  ;;  %s43_s18 = sadd.s32 1, %s577_s11 }
   0xa   : > { %p36_p0 = scmp.ge.s32.totalorder %s34_s17, 2  ;;  %p50_p1 = scmp.ne.s32.totalorder %s577_s11, %s573_s10 }
   0xb   : > { %p51_p2 = scmp.eq.s32.totalorder %s589_s14, 0  ;;  %p56_p3 = scmp.ne.s32.totalorder %s573_s10, %s569_s9 }
   0xc   : > { %s848_s17 = smov (%p36_p0, %s34_s17), 0  ;;  %p57_p5 = scmp.eq.s32.totalorder %s357_s15, 0 }
   0xd   : > { %p653_p4 = por %p51_p2, %p50_p1  ;;  %s40_s20 = ssub.s32 %s585_s13, %s848_s17 }
   0xe   : > { %p80_p6 = scmp.eq.s32.totalorder %s357_s15, 1  ;;  %p41_p7 = scmp.eq.s32.totalorder %s40_s20, 0 }
   0xf   : > { %p659_p8 = por %p57_p5, %p56_p3  ;;  %p86_p10 = scmp.eq.s32.totalorder %s358_s16, 1 }
  0x10   : > { %p663_p9 = por %p80_p6, %p50_p1  ;;  %p392_p13 = scmp.lt.s32.totalorder %s589_s14, 2 }
  0x11   : > { %s668_s23 = scalar_select %p41_p7, %s577_s11, %s43_s18  }
  0x12   : > { %s835_s22 = scalar_select %p663_p9, 1, 0 }
  0x13   : > { %p670_p11 = por %p86_p10, %p56_p3  ;;  %s132_s25 = sand.u32 1, %s577_s11  }
  0x14   : > { %s361_s26 = sshll.u32 %s132_s25, 4  ;;  %s374_s27 = sshll.u32 %s585_s13, 8 }
  0x15   : > { %s836_s24 = scalar_select %p670_p11, 1, 0 }
  0x16   : > { %s681_s30 = scalar_lea.hbm %s829_s0, %s374_s27  ;;  %s136_s3 = scalar_lea.vmem [#allocation2], %s361_s26 }
  0x17   : > { %s144_s4 = sshll.u32 %s136_s3, 4  ;;  %p687_p0 = pnand %p392_p13, %p653_p4  ;;  %s683_s4 = int_to_ptr.vmem [resolvable:$true] %s144_s4 }
  0x18   : > { %s692_s6 = scalar_lea.sflag [#allocation3], %s132_s25  ;;  %s445_s7 = scalar_lea.hbm %s681_s30, 256 }
  0x19   : > { %p446_p2 = scmp.ne.s32.totalorder %s681_s30, %s445_s7  ;;  %p447_p3 = pneg %p687_p0 }
  0x1a   : > { %s450_s16 = scalar_lea.hbm %s829_s0, 512  ;;  %p451_p4 = scmp.lt.u32.totalorder %s681_s30, %s829_s0 }
  0x1b   : > { %p448_p5 = pnand %p447_p3, %p446_p2  ;;  %p452_p7 = scmp.lt.u32.totalorder %s450_s16, %s445_s7 }
  0x1c   : > { %p454_p13 = scmp.lt.u32.totalorder %s445_s7, %s681_s30 }
  0x1d   : > { %p449_p6 = pneg %p448_p5  ;;  %p453_p10 = por %p452_p7, %p451_p4 }
  0x1f   : > { %p455_p12 = por %p454_p13, %p453_p10 }
  0x21   : > { %p456_p1 = pnand %p455_p12, %p449_p6 }
  0x23   : > { %459 = shalt.err (!%p456_p1)
}
  0x24   : > { %s460_s20 = scalar_lea.vmem %s683_s4, 256  ;;  %s591_s25 = smov [#allocation2]  }
  0x25   : > { %p461_p2 = scmp.ne.s32.totalorder %s683_s4, %s460_s20  ;;  %s465_s26 = sshll.u32 %s591_s25, 4  ;;  %s466_s26 = int_to_ptr.vmem [resolvable:$false] %s465_s26 }
  0x26   : > { %s467_s27 = scalar_lea.vmem %s466_s26, 512  ;;  %p468_p9 = scmp.lt.s32.totalorder %s683_s4, %s466_s26 }
  0x27   : > { %p463_p5 = pnand %p461_p2, %p447_p3  ;;  %p469_p4 = scmp.lt.s32.totalorder %s467_s27, %s460_s20 }
  0x29   : > { %p464_p11 = pneg %p463_p5  ;;  %p470_p7 = por %p469_p4, %p468_p9 }
  0x2b   : > { %p471_p10 = pnand %p470_p7, %p464_p11 }
  0x2d   : > { %474 = shalt.err (!%p471_p10)
}
  0x2e   : > { %s592_s28 = smov 128   ;;  %s593_s29 = smov 8  }
  0x2f   : > { %384 = dma.hbm_to_vmem [thread:$0]  (!%p687_p0), %s681_s30, 256, %s683_s4, %s692_s6, %s592_s28, %s592_s28, %s593_s29  }
  0x30   : > { %p152_p12 = scmp.lt.s32.totalorder %s589_s14, 3  ;;  %p838_p1 = scmp.ge.s32.totalorder %s589_s14, 1 }
  0x32   : > { %p153_p3 = pnand %p838_p1, %p152_p12 }
  0x33   : > { %s724_s3 = sand.u32 (!%p153_p3), 1, %s573_s10  }
  0x34   : > { %156 = sbr.rel (%p153_p3) target bundleno = 111 (0x6f), region = 24  ;;  %s365_s7 = sshll.u32 (!%p153_p3), %s724_s3, 4 }
  0x35   : > { %s159_s8 = scalar_lea.sflag (!%p153_p3), [#allocation3], %s724_s3  ;;  %s162_s15 = scalar_lea.vmem (!%p153_p3), [#allocation2], %s365_s7 }
  0x3b   : > { %556 = dma.done.wait (%p659_p8), %s159_s8, 256  }
  0x3c   : > { %558 = vsyncadd (%p659_p8), %s159_s8, 4294967040  ;;  %s366_s30 = sshll.u32 %s724_s3, 3  ;;  %vm194_vm0 = vcmask 261120   ;;  %v594_v0 = vmov 0.0   ;;  %v197_v1 = vld [vmem:[%s162_s15] sm:$0xff]  ;;  %v198_v2 = vld [vmem:[%s162_s15 + $0x8] sm:$0xff] }
  0x3d   : > { %s180_s4 = scalar_lea.vmem [#allocation5], %s366_s30  ;;  %s734_s5 = scalar_lea.vmem [#allocation6], %s366_s30  ;;  %v201_v3 = vsel %vm194_vm0, %v197_v1, 0.0  ;;  %v202_v4 = vsel %vm194_vm0, %v198_v2, 0.0  ;;  %v207_v5 = vmul.f32 %v197_v1, %v197_v1  ;;  %v208_v6 = vmul.f32 %v198_v2, %v198_v2 }
  0x3e   : > { %195 = vst.msk [vmem:[%s180_s4] sm:$0xff] %vm194_vm0, %v594_v0  ;;  %196 = vst.msk [vmem:[%s734_s5] sm:$0xff] %vm194_vm0, %v594_v0  ;;  %s370_s21 = sshll.u32 %s581_s12, 7  ;;  %s233_s6 = sshll.u32 %s180_s4, 4  ;;  %v203_v8 = vadd.f32 %v202_v4, %v201_v3  ;;  %s750_s6 = int_to_ptr.vmem [resolvable:$true] %s233_s6 }
  0x3f   : > { %v209_v10 = vsel %vm194_vm0, %v207_v5, 0.0  ;;  %v210_v11 = vsel %vm194_vm0, %v208_v6, 0.0  ;;  %s246_s16 = sshll.u32 %s734_s5, 4  ;;  %s748_s20 = scalar_lea.hbm %s830_s1, %s370_s21  ;;  %s758_s16 = int_to_ptr.vmem [resolvable:$true] %s246_s16 }
  0x40   : > { %v211_v13 = vadd.f32 %v210_v11, %v209_v10  ;;  %s756_s26 = scalar_lea.hbm %s831_s2, %s370_s21  ;;  %s215_s27 = scalar_lea.sflag [#allocation4], %s724_s3 }
  0x41   : > { %s475_s28 = scalar_lea.vmem %s750_s6, 128  ;;  %p839_p9 = scmp.ne.s32.totalorder %s835_s22, 0 }
  0x42   : > { %p476_p8 = scmp.ne.s32.totalorder %s750_s6, %s475_s28  ;;  %s595_s29 = smov [#allocation5]  }
  0x43   : > { %s479_s7 = sshll.u32 %s595_s29, 4  ;;  %s480_s7 = int_to_ptr.vmem [resolvable:$false] %s479_s7 }
  0x44   : > { %p477_p11 = pnand %p476_p8, %p839_p9  ;;  %s481_s8 = scalar_lea.vmem %s480_s7, 256 }
  0x45   : > { %v199_v7 = vld [vmem:[%s180_s4] sm:$0xff]  ;;  %v206_v9 = vld [vmem:[%s734_s5] sm:$0xff]  ;;  %p482_p6 = scmp.lt.s32.totalorder %s750_s6, %s480_s7  ;;  %p483_p13 = scmp.lt.s32.totalorder %s481_s8, %s475_s28 }
  0x46   : > { %v204_v12 = vadd.f32 %v203_v8, %v199_v7  ;;  %v212_v14 = vadd.f32 %v211_v13, %v206_v9  ;;  %p478_p0 = pneg %p477_p11 }
  0x47   : > { %p484_p2 = por %p483_p13, %p482_p6 }
  0x48   : > { %205 = vst.msk [vmem:[%s180_s4] sm:$0xff] %vm194_vm0, %v204_v12 }
  0x49   : > { %p485_p5 = pnand %p484_p2, %p478_p0 }
  0x4b   : > { %488 = shalt.err (!%p485_p5)
}
  0x4c   : > { %s489_s15 = scalar_lea.hbm %s748_s20, 128  ;;  %s493_s21 = scalar_lea.hbm %s830_s1, 256 }
  0x4d   : > { %p490_p4 = scmp.ne.s32.totalorder %s748_s20, %s489_s15  ;;  %p494_p12 = scmp.lt.u32.totalorder %s748_s20, %s830_s1 }
  0x4e   : > { %p495_p1 = scmp.lt.u32.totalorder %s493_s21, %s489_s15  ;;  %p497_p8 = scmp.lt.u32.totalorder %s489_s15, %s748_s20 }
  0x4f   : > { %p491_p7 = pnand %p490_p4, %p839_p9 }
  0x50   : > { %p496_p3 = por %p495_p1, %p494_p12 }
  0x51   : > { %p492_p10 = pneg %p491_p7 }
  0x52   : > { %p498_p11 = por %p497_p8, %p496_p3 }
  0x54   : > { %p499_p0 = pnand %p498_p11, %p492_p10 }
  0x56   : > { %502 = shalt.err (!%p499_p0)
}
  0x57   : > { %377 = dma.vmem_to_hbm [thread:$0]  (%p839_p9), %s750_s6, 128, %s748_s20, %s215_s27   ;;  %213 = vst.msk [vmem:[%s734_s5] sm:$0xff] %vm194_vm0, %v212_v14 }
  0x58   : > { %s220_s12 = scalar_lea.sflag [#allocation7], %s724_s3  ;;  %s503_s25 = scalar_lea.vmem %s758_s16, 128 }
  0x59   : > { %p504_p6 = scmp.ne.s32.totalorder %s758_s16, %s503_s25  ;;  %s596_s28 = smov [#allocation6]  }
  0x5a   : > { %s507_s29 = sshll.u32 %s596_s28, 4  ;;  %s508_s29 = int_to_ptr.vmem [resolvable:$false] %s507_s29 }
  0x5b   : > { %p505_p13 = pnand %p504_p6, %p839_p9  ;;  %s509_s7 = scalar_lea.vmem %s508_s29, 256 }
  0x5c   : > { %p510_p5 = scmp.lt.s32.totalorder %s758_s16, %s508_s29  ;;  %p511_p4 = scmp.lt.s32.totalorder %s509_s7, %s503_s25 }
  0x5d   : > { %p506_p2 = pneg %p505_p13 }
  0x5e   : > { %p512_p7 = por %p511_p4, %p510_p5 }
  0x60   : > { %p513_p10 = pnand %p512_p7, %p506_p2 }
  0x62   : > { %516 = shalt.err (!%p513_p10)
}
  0x63   : > { %s517_s3 = scalar_lea.hbm %s756_s26, 128  ;;  %s521_s20 = scalar_lea.hbm %s831_s2, 256 }
  0x64   : > { %p518_p12 = scmp.ne.s32.totalorder %s756_s26, %s517_s3  ;;  %p522_p8 = scmp.lt.u32.totalorder %s756_s26, %s831_s2 }
  0x65   : > { %p523_p11 = scmp.lt.u32.totalorder %s521_s20, %s517_s3  ;;  %p525_p6 = scmp.lt.u32.totalorder %s517_s3, %s756_s26 }
  0x66   : > { %p519_p1 = pnand %p518_p12, %p839_p9 }
  0x67   : > { %p524_p0 = por %p523_p11, %p522_p8 }
  0x68   : > { %p520_p3 = pneg %p519_p1 }
  0x69   : > { %p526_p13 = por %p525_p6, %p524_p0 }
  0x6b   : > { %p527_p2 = pnand %p526_p13, %p520_p3 }
  0x6d   : > { %530 = shalt.err (!%p527_p2)
}
  0x6e   : > { %378 = dma.vmem_to_hbm [thread:$0]  (%p839_p9), %s758_s16, 128, %s756_s26, %s220_s12  }
  0x6f PF: > { %s258_s15 = sand.u32 1, %s569_s9   ;;  %p840_p5 = scmp.ne.s32.totalorder %s836_s24, 0 }
  0x70   : > { %p841_p4 = scmp.ge.s32.totalorder %s589_s14, 2  ;;  %s259_s30 = scalar_lea.sflag [#allocation4], %s258_s15 }
  0x72   : > { %p386_p7 = pnand %p841_p4, %p840_p5 }
  0x74   : > { %560 = dma.done.wait (!%p386_p7), %s259_s30, 128  }
  0x75   : > { %562 = vsyncadd (!%p386_p7), %s259_s30, 4294967168  ;;  %s268_s4 = scalar_lea.sflag [#allocation7], %s258_s15 }
  0x76   : > { %564 = dma.done.wait (!%p386_p7), %s268_s4, 128  }
  0x77   : > { %566 = vsyncadd (!%p386_p7), %s268_s4, 4294967168  ;;  %s22_s14 = sadd.s32 1, %s589_s14   ;;  %s842_s9 = smov %s573_s10 }
  0x78   : > { %p19_p10 = scmp.ge.s32.totalorder %s22_s14, 4   ;;  %s843_s10 = smov %s577_s11 }
  0x79   : > { %s844_s11 = smov %s668_s23  ;;  %s845_s12 = smov %s585_s13 }
  0x7a   : > { %s846_s13 = smov %s848_s17  ;;  %21 = sbr.rel (!%p19_p10) target bundleno = 8 (0x8), region = 90 }
  0x81   :  { %273 = vsyncpa [#allocation3], 1 }
  0x82   :  { %275 = vsyncpa [#allocation3 + $0x1], 1 }
  0x83   :  { %276 = vsyncpa [#allocation4], 1 }
  0x84   :  { %278 = vsyncpa [#allocation4 + $0x1], 1 }
  0x85   :  { %279 = vsyncpa [#allocation7], 1 }
  0x86   :  { %281 = vsyncpa [#allocation7 + $0x1], 1 }

</bundles_post_ra>
